<compile_context>
chip_gen: v5e
topology: v5e:2x2
jax: 0.10.0
libtpu: 0.0.40
codegen_flags: <defaults>
</compile_context>

<pallas_src>
import functools

import jax
import jax.numpy as jnp
from jax import lax
from jax.experimental import pallas as pl
from jax.experimental.pallas import tpu as pltpu


def _tree_sum(chunks):
    """Pairwise tree-sum of a list of equally shaped arrays (short dep chain)."""
    while len(chunks) > 1:
        nxt = [chunks[i] + chunks[i + 1] for i in range(0, len(chunks) - 1, 2)]
        if len(chunks) % 2:
            nxt.append(chunks[-1])
        chunks = nxt
    return chunks[0]


def _cin_kernel(hidden_layers, m, D, TB, *refs):
    """Per-batch-tile CIN forward. refs = (x_ref, w_0..w_{L-1}, p_ref).

    x_ref: (m, D*TB) f32, merged lane column = d*TB + b (d-major, b-minor)
    w_k  : (m*H_{k-1}, H_k) bf16
    p_ref: (sum_k H_k, TB) f32
    """
    L = len(hidden_layers)
    x_ref = refs[0]
    w_refs = refs[1:1 + L]
    p_ref = refs[1 + L]

    N = D * TB
    x0 = x_ref[...]                       # (m, N) f32
    xk = x0                               # current feature maps (H_{k-1}, N) f32
    h_prev = m
    off = 0
    for k, hk in enumerate(hidden_layers):
        w = w_refs[k][...]                # (m*h_prev, hk) bf16
        # z[i*h_prev + j, n] = x0[i, n] * xk[j, n] ; merge of leading dims only,
        # lane axis untouched (layout free).
        z = (x0[:, None, :] * xk[None, :, :]).reshape(m * h_prev, N)
        # Single MXU matmul: (hk, R) x (R, TB*D), bf16 operands, f32 accumulate.
        xn = lax.dot_general(
            w, z.astype(jnp.bfloat16),
            (((0,), (0,)), ((), ())),
            preferred_element_type=jnp.float32)          # (hk, N) f32
        # p_k[h, b] = sum_d xn[h, d*TB + b] : lane-aligned static slices + VPU adds.
        p_k = _tree_sum([xn[:, d * TB:(d + 1) * TB] for d in range(D)])  # (hk, TB)
        p_ref[pl.ds(off, hk), :] = p_k                   # static row offset store
        xk = xn
        h_prev = hk
        off += hk


def cin_forward(x, weights, hidden_layers, *, tb=None):
    """x: (B, m, D) f32; weights[k]: (m, H_{k-1}, H_k) f32. Returns (B, sum H_k)."""
    B, m, D = x.shape
    total_h = sum(hidden_layers)

    # Batch tile size: cap at 128 (fits 32 MiB scoped VMEM on v5e/v6e/v7x).
    if tb is None:
        tb = B if B <= 128 else 128
    G = -(-B // tb)
    Bp = G * tb
    if Bp != B:
        x = jnp.pad(x, ((0, Bp - B), (0, 0), (0, 0)))

    # d-major / b-minor merged lane layout, grouped by batch tile:
    #   xf[i, g*D*tb + d*tb + b] = x[g*tb + b, i, d]
    xf = jnp.transpose(x.reshape(G, tb, m, D), (2, 0, 3, 1)).reshape(m, G * D * tb)

    # Flatten weights so the in-kernel contraction is a plain 2-D matmul, and
    # cast once to bf16 (MXU-native operands; accumulation stays f32).
    w_flat = [w.reshape(-1, w.shape[-1]).astype(jnp.bfloat16) for w in weights]

    kernel = functools.partial(_cin_kernel, tuple(hidden_layers), m, D, tb)

    in_specs = [pl.BlockSpec((m, D * tb), lambda g: (0, g))]
    for wf in w_flat:
        R, H = wf.shape
        in_specs.append(pl.BlockSpec((R, H), lambda g: (0, 0)))

    out = pl.pallas_call(
        kernel,
        out_shape=jax.ShapeDtypeStruct((total_h, Bp), jnp.float32),
        grid_spec=pltpu.PrefetchScalarGridSpec(
            num_scalar_prefetch=0,
            grid=(G,),
            in_specs=in_specs,
            out_specs=pl.BlockSpec((total_h, tb), lambda g: (0, g)),
        ),
        compiler_params=pltpu.CompilerParams(
            dimension_semantics=("parallel",),
            vmem_limit_bytes=32 * 1024 * 1024),
    )(xf, *w_flat)

    return out.T[:B]                      # (B, sum(H_k)) — matches torch.cat(ps, dim=1)


def cin_reference(x, weights):
    """Pure-JAX f32 reference mirroring the PyTorch forward exactly."""
    x0 = x
    xk = x
    ps = []
    for W in weights:
        xn = jnp.einsum('bid,bjd,ijh->bhd', x0, xk, W)   # (B, H_k, D)
        ps.append(jnp.sum(xn, axis=2))
        xk = xn
    return jnp.concatenate(ps, axis=1)


if __name__ == "__main__":
    # Small shapes consistent with the module: input_dim = (m, D), hidden_layers list.
    B, m, D = 2, 8, 128
    hidden_layers = [16, 8]

    key = jax.random.PRNGKey(0)
    keys = jax.random.split(key, 1 + len(hidden_layers))

    x = jax.random.uniform(keys[0], (B, m, D), dtype=jnp.float32)

    # Deterministic params matching nn.Parameter(torch.rand(m, H_{k-1}, H_k)).
    weights = []
    h_prev = m
    for i, hk in enumerate(hidden_layers):
        weights.append(jax.random.uniform(keys[1 + i], (m, h_prev, hk),
                                          dtype=jnp.float32))
        h_prev = hk

    p = cin_forward(x, weights, hidden_layers)
    p = jax.block_until_ready(p)

    p_ref = cin_reference(x, weights)
    assert p.shape == (B, sum(hidden_layers)), p.shape
    # bf16 MXU operands with f32 accumulation: inputs are all-positive uniforms,
    # so relative error stays ~<=1%; compare with loosened tolerance.
    assert jnp.allclose(p, p_ref, rtol=3e-2, atol=1e-2), (
        float(jnp.max(jnp.abs(p - p_ref) / jnp.maximum(jnp.abs(p_ref), 1e-6))))

    print("KERNEL_OK")
</pallas_src>

<mosaic_0001>
module attributes {stable_mosaic.version = 11 : i64} {
  func.func @_cin_kernel(%arg0: i32, %arg1: memref<8x256xf32, #tpu.memory_space<vmem>>, %arg2: memref<64x16xbf16, #tpu.memory_space<vmem>>, %arg3: memref<128x8xbf16, #tpu.memory_space<vmem>>, %arg4: memref<24x2xf32, #tpu.memory_space<vmem>>) attributes {dimension_semantics = [#tpu.dimension_semantics<parallel>], iteration_bounds = array<i64: 1>, scalar_prefetch = 0 : i64, scratch_operands = 0 : i64, tpu.core_type = #tpu.core_type<tc>, window_params = [{transform_indices = @transform_0, window_bounds = array<i64: 8, 256>}, {pipeline_mode = #tpu.pipeline_mode<synchronous>, transform_indices = @transform_1, window_bounds = array<i64: 64, 16>}, {pipeline_mode = #tpu.pipeline_mode<synchronous>, transform_indices = @transform_2, window_bounds = array<i64: 128, 8>}, {transform_indices = @transform_3, window_bounds = array<i64: 24, 2>}]} {
    %c0 = arith.constant 0 : index
    %c0_0 = arith.constant 0 : index
    %0 = vector.load %arg1[%c0, %c0_0] : memref<8x256xf32, #tpu.memory_space<vmem>>, vector<8x256xf32>
    %c0_1 = arith.constant 0 : index
    %c0_2 = arith.constant 0 : index
    %1 = vector.load %arg2[%c0_1, %c0_2] : memref<64x16xbf16, #tpu.memory_space<vmem>>, vector<64x16xbf16>
    %2 = vector.shape_cast %0 : vector<8x256xf32> to vector<8x1x256xf32>
    %3 = vector.shape_cast %0 : vector<8x256xf32> to vector<1x8x256xf32>
    %4 = vector.broadcast %2 : vector<8x1x256xf32> to vector<8x8x256xf32>
    %5 = vector.broadcast %3 : vector<1x8x256xf32> to vector<8x8x256xf32>
    %6 = arith.mulf %4, %5 : vector<8x8x256xf32>
    %7 = vector.shape_cast %6 : vector<8x8x256xf32> to vector<64x256xf32>
    %8 = arith.truncf %7 : vector<64x256xf32> to vector<64x256xbf16>
    %cst = arith.constant dense<0.000000e+00> : vector<16x256xf32>
    %9 = tpu.matmul %1, %8, %cst {dimension_numbers = #tpu.dot_dimension_numbers<[0], [0], [1], [1], [0, 1, 1, 1], [], []>} : vector<64x16xbf16>, vector<64x256xbf16>, vector<16x256xf32> -> vector<16x256xf32>
    %10 = vector.extract_strided_slice %9 {offsets = [0, 0], sizes = [16, 2], strides = [1, 1]} : vector<16x256xf32> to vector<16x2xf32>
    %11 = vector.extract_strided_slice %9 {offsets = [0, 2], sizes = [16, 2], strides = [1, 1]} : vector<16x256xf32> to vector<16x2xf32>
    %12 = vector.extract_strided_slice %9 {offsets = [0, 4], sizes = [16, 2], strides = [1, 1]} : vector<16x256xf32> to vector<16x2xf32>
    %13 = vector.extract_strided_slice %9 {offsets = [0, 6], sizes = [16, 2], strides = [1, 1]} : vector<16x256xf32> to vector<16x2xf32>
    %14 = vector.extract_strided_slice %9 {offsets = [0, 8], sizes = [16, 2], strides = [1, 1]} : vector<16x256xf32> to vector<16x2xf32>
    %15 = vector.extract_strided_slice %9 {offsets = [0, 10], sizes = [16, 2], strides = [1, 1]} : vector<16x256xf32> to vector<16x2xf32>
    %16 = vector.extract_strided_slice %9 {offsets = [0, 12], sizes = [16, 2], strides = [1, 1]} : vector<16x256xf32> to vector<16x2xf32>
    %17 = vector.extract_strided_slice %9 {offsets = [0, 14], sizes = [16, 2], strides = [1, 1]} : vector<16x256xf32> to vector<16x2xf32>
    %18 = vector.extract_strided_slice %9 {offsets = [0, 16], sizes = [16, 2], strides = [1, 1]} : vector<16x256xf32> to vector<16x2xf32>
    %19 = vector.extract_strided_slice %9 {offsets = [0, 18], sizes = [16, 2], strides = [1, 1]} : vector<16x256xf32> to vector<16x2xf32>
    %20 = vector.extract_strided_slice %9 {offsets = [0, 20], sizes = [16, 2], strides = [1, 1]} : vector<16x256xf32> to vector<16x2xf32>
    %21 = vector.extract_strided_slice %9 {offsets = [0, 22], sizes = [16, 2], strides = [1, 1]} : vector<16x256xf32> to vector<16x2xf32>
    %22 = vector.extract_strided_slice %9 {offsets = [0, 24], sizes = [16, 2], strides = [1, 1]} : vector<16x256xf32> to vector<16x2xf32>
    %23 = vector.extract_strided_slice %9 {offsets = [0, 26], sizes = [16, 2], strides = [1, 1]} : vector<16x256xf32> to vector<16x2xf32>
    %24 = vector.extract_strided_slice %9 {offsets = [0, 28], sizes = [16, 2], strides = [1, 1]} : vector<16x256xf32> to vector<16x2xf32>
    %25 = vector.extract_strided_slice %9 {offsets = [0, 30], sizes = [16, 2], strides = [1, 1]} : vector<16x256xf32> to vector<16x2xf32>
    %26 = vector.extract_strided_slice %9 {offsets = [0, 32], sizes = [16, 2], strides = [1, 1]} : vector<16x256xf32> to vector<16x2xf32>
    %27 = vector.extract_strided_slice %9 {offsets = [0, 34], sizes = [16, 2], strides = [1, 1]} : vector<16x256xf32> to vector<16x2xf32>
    %28 = vector.extract_strided_slice %9 {offsets = [0, 36], sizes = [16, 2], strides = [1, 1]} : vector<16x256xf32> to vector<16x2xf32>
    %29 = vector.extract_strided_slice %9 {offsets = [0, 38], sizes = [16, 2], strides = [1, 1]} : vector<16x256xf32> to vector<16x2xf32>
    %30 = vector.extract_strided_slice %9 {offsets = [0, 40], sizes = [16, 2], strides = [1, 1]} : vector<16x256xf32> to vector<16x2xf32>
    %31 = vector.extract_strided_slice %9 {offsets = [0, 42], sizes = [16, 2], strides = [1, 1]} : vector<16x256xf32> to vector<16x2xf32>
    %32 = vector.extract_strided_slice %9 {offsets = [0, 44], sizes = [16, 2], strides = [1, 1]} : vector<16x256xf32> to vector<16x2xf32>
    %33 = vector.extract_strided_slice %9 {offsets = [0, 46], sizes = [16, 2], strides = [1, 1]} : vector<16x256xf32> to vector<16x2xf32>
    %34 = vector.extract_strided_slice %9 {offsets = [0, 48], sizes = [16, 2], strides = [1, 1]} : vector<16x256xf32> to vector<16x2xf32>
    %35 = vector.extract_strided_slice %9 {offsets = [0, 50], sizes = [16, 2], strides = [1, 1]} : vector<16x256xf32> to vector<16x2xf32>
    %36 = vector.extract_strided_slice %9 {offsets = [0, 52], sizes = [16, 2], strides = [1, 1]} : vector<16x256xf32> to vector<16x2xf32>
    %37 = vector.extract_strided_slice %9 {offsets = [0, 54], sizes = [16, 2], strides = [1, 1]} : vector<16x256xf32> to vector<16x2xf32>
    %38 = vector.extract_strided_slice %9 {offsets = [0, 56], sizes = [16, 2], strides = [1, 1]} : vector<16x256xf32> to vector<16x2xf32>
    %39 = vector.extract_strided_slice %9 {offsets = [0, 58], sizes = [16, 2], strides = [1, 1]} : vector<16x256xf32> to vector<16x2xf32>
    %40 = vector.extract_strided_slice %9 {offsets = [0, 60], sizes = [16, 2], strides = [1, 1]} : vector<16x256xf32> to vector<16x2xf32>
    %41 = vector.extract_strided_slice %9 {offsets = [0, 62], sizes = [16, 2], strides = [1, 1]} : vector<16x256xf32> to vector<16x2xf32>
    %42 = vector.extract_strided_slice %9 {offsets = [0, 64], sizes = [16, 2], strides = [1, 1]} : vector<16x256xf32> to vector<16x2xf32>
    %43 = vector.extract_strided_slice %9 {offsets = [0, 66], sizes = [16, 2], strides = [1, 1]} : vector<16x256xf32> to vector<16x2xf32>
    %44 = vector.extract_strided_slice %9 {offsets = [0, 68], sizes = [16, 2], strides = [1, 1]} : vector<16x256xf32> to vector<16x2xf32>
    %45 = vector.extract_strided_slice %9 {offsets = [0, 70], sizes = [16, 2], strides = [1, 1]} : vector<16x256xf32> to vector<16x2xf32>
    %46 = vector.extract_strided_slice %9 {offsets = [0, 72], sizes = [16, 2], strides = [1, 1]} : vector<16x256xf32> to vector<16x2xf32>
    %47 = vector.extract_strided_slice %9 {offsets = [0, 74], sizes = [16, 2], strides = [1, 1]} : vector<16x256xf32> to vector<16x2xf32>
    %48 = vector.extract_strided_slice %9 {offsets = [0, 76], sizes = [16, 2], strides = [1, 1]} : vector<16x256xf32> to vector<16x2xf32>
    %49 = vector.extract_strided_slice %9 {offsets = [0, 78], sizes = [16, 2], strides = [1, 1]} : vector<16x256xf32> to vector<16x2xf32>
    %50 = vector.extract_strided_slice %9 {offsets = [0, 80], sizes = [16, 2], strides = [1, 1]} : vector<16x256xf32> to vector<16x2xf32>
    %51 = vector.extract_strided_slice %9 {offsets = [0, 82], sizes = [16, 2], strides = [1, 1]} : vector<16x256xf32> to vector<16x2xf32>
    %52 = vector.extract_strided_slice %9 {offsets = [0, 84], sizes = [16, 2], strides = [1, 1]} : vector<16x256xf32> to vector<16x2xf32>
    %53 = vector.extract_strided_slice %9 {offsets = [0, 86], sizes = [16, 2], strides = [1, 1]} : vector<16x256xf32> to vector<16x2xf32>
    %54 = vector.extract_strided_slice %9 {offsets = [0, 88], sizes = [16, 2], strides = [1, 1]} : vector<16x256xf32> to vector<16x2xf32>
    %55 = vector.extract_strided_slice %9 {offsets = [0, 90], sizes = [16, 2], strides = [1, 1]} : vector<16x256xf32> to vector<16x2xf32>
    %56 = vector.extract_strided_slice %9 {offsets = [0, 92], sizes = [16, 2], strides = [1, 1]} : vector<16x256xf32> to vector<16x2xf32>
    %57 = vector.extract_strided_slice %9 {offsets = [0, 94], sizes = [16, 2], strides = [1, 1]} : vector<16x256xf32> to vector<16x2xf32>
    %58 = vector.extract_strided_slice %9 {offsets = [0, 96], sizes = [16, 2], strides = [1, 1]} : vector<16x256xf32> to vector<16x2xf32>
    %59 = vector.extract_strided_slice %9 {offsets = [0, 98], sizes = [16, 2], strides = [1, 1]} : vector<16x256xf32> to vector<16x2xf32>
    %60 = vector.extract_strided_slice %9 {offsets = [0, 100], sizes = [16, 2], strides = [1, 1]} : vector<16x256xf32> to vector<16x2xf32>
    %61 = vector.extract_strided_slice %9 {offsets = [0, 102], sizes = [16, 2], strides = [1, 1]} : vector<16x256xf32> to vector<16x2xf32>
    %62 = vector.extract_strided_slice %9 {offsets = [0, 104], sizes = [16, 2], strides = [1, 1]} : vector<16x256xf32> to vector<16x2xf32>
    %63 = vector.extract_strided_slice %9 {offsets = [0, 106], sizes = [16, 2], strides = [1, 1]} : vector<16x256xf32> to vector<16x2xf32>
    %64 = vector.extract_strided_slice %9 {offsets = [0, 108], sizes = [16, 2], strides = [1, 1]} : vector<16x256xf32> to vector<16x2xf32>
    %65 = vector.extract_strided_slice %9 {offsets = [0, 110], sizes = [16, 2], strides = [1, 1]} : vector<16x256xf32> to vector<16x2xf32>
    %66 = vector.extract_strided_slice %9 {offsets = [0, 112], sizes = [16, 2], strides = [1, 1]} : vector<16x256xf32> to vector<16x2xf32>
    %67 = vector.extract_strided_slice %9 {offsets = [0, 114], sizes = [16, 2], strides = [1, 1]} : vector<16x256xf32> to vector<16x2xf32>
    %68 = vector.extract_strided_slice %9 {offsets = [0, 116], sizes = [16, 2], strides = [1, 1]} : vector<16x256xf32> to vector<16x2xf32>
    %69 = vector.extract_strided_slice %9 {offsets = [0, 118], sizes = [16, 2], strides = [1, 1]} : vector<16x256xf32> to vector<16x2xf32>
    %70 = vector.extract_strided_slice %9 {offsets = [0, 120], sizes = [16, 2], strides = [1, 1]} : vector<16x256xf32> to vector<16x2xf32>
    %71 = vector.extract_strided_slice %9 {offsets = [0, 122], sizes = [16, 2], strides = [1, 1]} : vector<16x256xf32> to vector<16x2xf32>
    %72 = vector.extract_strided_slice %9 {offsets = [0, 124], sizes = [16, 2], strides = [1, 1]} : vector<16x256xf32> to vector<16x2xf32>
    %73 = vector.extract_strided_slice %9 {offsets = [0, 126], sizes = [16, 2], strides = [1, 1]} : vector<16x256xf32> to vector<16x2xf32>
    %74 = vector.extract_strided_slice %9 {offsets = [0, 128], sizes = [16, 2], strides = [1, 1]} : vector<16x256xf32> to vector<16x2xf32>
    %75 = vector.extract_strided_slice %9 {offsets = [0, 130], sizes = [16, 2], strides = [1, 1]} : vector<16x256xf32> to vector<16x2xf32>
    %76 = vector.extract_strided_slice %9 {offsets = [0, 132], sizes = [16, 2], strides = [1, 1]} : vector<16x256xf32> to vector<16x2xf32>
    %77 = vector.extract_strided_slice %9 {offsets = [0, 134], sizes = [16, 2], strides = [1, 1]} : vector<16x256xf32> to vector<16x2xf32>
    %78 = vector.extract_strided_slice %9 {offsets = [0, 136], sizes = [16, 2], strides = [1, 1]} : vector<16x256xf32> to vector<16x2xf32>
    %79 = vector.extract_strided_slice %9 {offsets = [0, 138], sizes = [16, 2], strides = [1, 1]} : vector<16x256xf32> to vector<16x2xf32>
    %80 = vector.extract_strided_slice %9 {offsets = [0, 140], sizes = [16, 2], strides = [1, 1]} : vector<16x256xf32> to vector<16x2xf32>
    %81 = vector.extract_strided_slice %9 {offsets = [0, 142], sizes = [16, 2], strides = [1, 1]} : vector<16x256xf32> to vector<16x2xf32>
    %82 = vector.extract_strided_slice %9 {offsets = [0, 144], sizes = [16, 2], strides = [1, 1]} : vector<16x256xf32> to vector<16x2xf32>
    %83 = vector.extract_strided_slice %9 {offsets = [0, 146], sizes = [16, 2], strides = [1, 1]} : vector<16x256xf32> to vector<16x2xf32>
    %84 = vector.extract_strided_slice %9 {offsets = [0, 148], sizes = [16, 2], strides = [1, 1]} : vector<16x256xf32> to vector<16x2xf32>
    %85 = vector.extract_strided_slice %9 {offsets = [0, 150], sizes = [16, 2], strides = [1, 1]} : vector<16x256xf32> to vector<16x2xf32>
    %86 = vector.extract_strided_slice %9 {offsets = [0, 152], sizes = [16, 2], strides = [1, 1]} : vector<16x256xf32> to vector<16x2xf32>
    %87 = vector.extract_strided_slice %9 {offsets = [0, 154], sizes = [16, 2], strides = [1, 1]} : vector<16x256xf32> to vector<16x2xf32>
    %88 = vector.extract_strided_slice %9 {offsets = [0, 156], sizes = [16, 2], strides = [1, 1]} : vector<16x256xf32> to vector<16x2xf32>
    %89 = vector.extract_strided_slice %9 {offsets = [0, 158], sizes = [16, 2], strides = [1, 1]} : vector<16x256xf32> to vector<16x2xf32>
    %90 = vector.extract_strided_slice %9 {offsets = [0, 160], sizes = [16, 2], strides = [1, 1]} : vector<16x256xf32> to vector<16x2xf32>
    %91 = vector.extract_strided_slice %9 {offsets = [0, 162], sizes = [16, 2], strides = [1, 1]} : vector<16x256xf32> to vector<16x2xf32>
    %92 = vector.extract_strided_slice %9 {offsets = [0, 164], sizes = [16, 2], strides = [1, 1]} : vector<16x256xf32> to vector<16x2xf32>
    %93 = vector.extract_strided_slice %9 {offsets = [0, 166], sizes = [16, 2], strides = [1, 1]} : vector<16x256xf32> to vector<16x2xf32>
    %94 = vector.extract_strided_slice %9 {offsets = [0, 168], sizes = [16, 2], strides = [1, 1]} : vector<16x256xf32> to vector<16x2xf32>
    %95 = vector.extract_strided_slice %9 {offsets = [0, 170], sizes = [16, 2], strides = [1, 1]} : vector<16x256xf32> to vector<16x2xf32>
    %96 = vector.extract_strided_slice %9 {offsets = [0, 172], sizes = [16, 2], strides = [1, 1]} : vector<16x256xf32> to vector<16x2xf32>
    %97 = vector.extract_strided_slice %9 {offsets = [0, 174], sizes = [16, 2], strides = [1, 1]} : vector<16x256xf32> to vector<16x2xf32>
    %98 = vector.extract_strided_slice %9 {offsets = [0, 176], sizes = [16, 2], strides = [1, 1]} : vector<16x256xf32> to vector<16x2xf32>
    %99 = vector.extract_strided_slice %9 {offsets = [0, 178], sizes = [16, 2], strides = [1, 1]} : vector<16x256xf32> to vector<16x2xf32>
    %100 = vector.extract_strided_slice %9 {offsets = [0, 180], sizes = [16, 2], strides = [1, 1]} : vector<16x256xf32> to vector<16x2xf32>
    %101 = vector.extract_strided_slice %9 {offsets = [0, 182], sizes = [16, 2], strides = [1, 1]} : vector<16x256xf32> to vector<16x2xf32>
    %102 = vector.extract_strided_slice %9 {offsets = [0, 184], sizes = [16, 2], strides = [1, 1]} : vector<16x256xf32> to vector<16x2xf32>
    %103 = vector.extract_strided_slice %9 {offsets = [0, 186], sizes = [16, 2], strides = [1, 1]} : vector<16x256xf32> to vector<16x2xf32>
    %104 = vector.extract_strided_slice %9 {offsets = [0, 188], sizes = [16, 2], strides = [1, 1]} : vector<16x256xf32> to vector<16x2xf32>
    %105 = vector.extract_strided_slice %9 {offsets = [0, 190], sizes = [16, 2], strides = [1, 1]} : vector<16x256xf32> to vector<16x2xf32>
    %106 = vector.extract_strided_slice %9 {offsets = [0, 192], sizes = [16, 2], strides = [1, 1]} : vector<16x256xf32> to vector<16x2xf32>
    %107 = vector.extract_strided_slice %9 {offsets = [0, 194], sizes = [16, 2], strides = [1, 1]} : vector<16x256xf32> to vector<16x2xf32>
    %108 = vector.extract_strided_slice %9 {offsets = [0, 196], sizes = [16, 2], strides = [1, 1]} : vector<16x256xf32> to vector<16x2xf32>
    %109 = vector.extract_strided_slice %9 {offsets = [0, 198], sizes = [16, 2], strides = [1, 1]} : vector<16x256xf32> to vector<16x2xf32>
    %110 = vector.extract_strided_slice %9 {offsets = [0, 200], sizes = [16, 2], strides = [1, 1]} : vector<16x256xf32> to vector<16x2xf32>
    %111 = vector.extract_strided_slice %9 {offsets = [0, 202], sizes = [16, 2], strides = [1, 1]} : vector<16x256xf32> to vector<16x2xf32>
    %112 = vector.extract_strided_slice %9 {offsets = [0, 204], sizes = [16, 2], strides = [1, 1]} : vector<16x256xf32> to vector<16x2xf32>
    %113 = vector.extract_strided_slice %9 {offsets = [0, 206], sizes = [16, 2], strides = [1, 1]} : vector<16x256xf32> to vector<16x2xf32>
    %114 = vector.extract_strided_slice %9 {offsets = [0, 208], sizes = [16, 2], strides = [1, 1]} : vector<16x256xf32> to vector<16x2xf32>
    %115 = vector.extract_strided_slice %9 {offsets = [0, 210], sizes = [16, 2], strides = [1, 1]} : vector<16x256xf32> to vector<16x2xf32>
    %116 = vector.extract_strided_slice %9 {offsets = [0, 212], sizes = [16, 2], strides = [1, 1]} : vector<16x256xf32> to vector<16x2xf32>
    %117 = vector.extract_strided_slice %9 {offsets = [0, 214], sizes = [16, 2], strides = [1, 1]} : vector<16x256xf32> to vector<16x2xf32>
    %118 = vector.extract_strided_slice %9 {offsets = [0, 216], sizes = [16, 2], strides = [1, 1]} : vector<16x256xf32> to vector<16x2xf32>
    %119 = vector.extract_strided_slice %9 {offsets = [0, 218], sizes = [16, 2], strides = [1, 1]} : vector<16x256xf32> to vector<16x2xf32>
    %120 = vector.extract_strided_slice %9 {offsets = [0, 220], sizes = [16, 2], strides = [1, 1]} : vector<16x256xf32> to vector<16x2xf32>
    %121 = vector.extract_strided_slice %9 {offsets = [0, 222], sizes = [16, 2], strides = [1, 1]} : vector<16x256xf32> to vector<16x2xf32>
    %122 = vector.extract_strided_slice %9 {offsets = [0, 224], sizes = [16, 2], strides = [1, 1]} : vector<16x256xf32> to vector<16x2xf32>
    %123 = vector.extract_strided_slice %9 {offsets = [0, 226], sizes = [16, 2], strides = [1, 1]} : vector<16x256xf32> to vector<16x2xf32>
    %124 = vector.extract_strided_slice %9 {offsets = [0, 228], sizes = [16, 2], strides = [1, 1]} : vector<16x256xf32> to vector<16x2xf32>
    %125 = vector.extract_strided_slice %9 {offsets = [0, 230], sizes = [16, 2], strides = [1, 1]} : vector<16x256xf32> to vector<16x2xf32>
    %126 = vector.extract_strided_slice %9 {offsets = [0, 232], sizes = [16, 2], strides = [1, 1]} : vector<16x256xf32> to vector<16x2xf32>
    %127 = vector.extract_strided_slice %9 {offsets = [0, 234], sizes = [16, 2], strides = [1, 1]} : vector<16x256xf32> to vector<16x2xf32>
    %128 = vector.extract_strided_slice %9 {offsets = [0, 236], sizes = [16, 2], strides = [1, 1]} : vector<16x256xf32> to vector<16x2xf32>
    %129 = vector.extract_strided_slice %9 {offsets = [0, 238], sizes = [16, 2], strides = [1, 1]} : vector<16x256xf32> to vector<16x2xf32>
    %130 = vector.extract_strided_slice %9 {offsets = [0, 240], sizes = [16, 2], strides = [1, 1]} : vector<16x256xf32> to vector<16x2xf32>
    %131 = vector.extract_strided_slice %9 {offsets = [0, 242], sizes = [16, 2], strides = [1, 1]} : vector<16x256xf32> to vector<16x2xf32>
    %132 = vector.extract_strided_slice %9 {offsets = [0, 244], sizes = [16, 2], strides = [1, 1]} : vector<16x256xf32> to vector<16x2xf32>
    %133 = vector.extract_strided_slice %9 {offsets = [0, 246], sizes = [16, 2], strides = [1, 1]} : vector<16x256xf32> to vector<16x2xf32>
    %134 = vector.extract_strided_slice %9 {offsets = [0, 248], sizes = [16, 2], strides = [1, 1]} : vector<16x256xf32> to vector<16x2xf32>
    %135 = vector.extract_strided_slice %9 {offsets = [0, 250], sizes = [16, 2], strides = [1, 1]} : vector<16x256xf32> to vector<16x2xf32>
    %136 = vector.extract_strided_slice %9 {offsets = [0, 252], sizes = [16, 2], strides = [1, 1]} : vector<16x256xf32> to vector<16x2xf32>
    %137 = vector.extract_strided_slice %9 {offsets = [0, 254], sizes = [16, 2], strides = [1, 1]} : vector<16x256xf32> to vector<16x2xf32>
    %138 = arith.addf %10, %11 : vector<16x2xf32>
    %139 = arith.addf %12, %13 : vector<16x2xf32>
    %140 = arith.addf %14, %15 : vector<16x2xf32>
    %141 = arith.addf %16, %17 : vector<16x2xf32>
    %142 = arith.addf %18, %19 : vector<16x2xf32>
    %143 = arith.addf %20, %21 : vector<16x2xf32>
    %144 = arith.addf %22, %23 : vector<16x2xf32>
    %145 = arith.addf %24, %25 : vector<16x2xf32>
    %146 = arith.addf %26, %27 : vector<16x2xf32>
    %147 = arith.addf %28, %29 : vector<16x2xf32>
    %148 = arith.addf %30, %31 : vector<16x2xf32>
    %149 = arith.addf %32, %33 : vector<16x2xf32>
    %150 = arith.addf %34, %35 : vector<16x2xf32>
    %151 = arith.addf %36, %37 : vector<16x2xf32>
    %152 = arith.addf %38, %39 : vector<16x2xf32>
    %153 = arith.addf %40, %41 : vector<16x2xf32>
    %154 = arith.addf %42, %43 : vector<16x2xf32>
    %155 = arith.addf %44, %45 : vector<16x2xf32>
    %156 = arith.addf %46, %47 : vector<16x2xf32>
    %157 = arith.addf %48, %49 : vector<16x2xf32>
    %158 = arith.addf %50, %51 : vector<16x2xf32>
    %159 = arith.addf %52, %53 : vector<16x2xf32>
    %160 = arith.addf %54, %55 : vector<16x2xf32>
    %161 = arith.addf %56, %57 : vector<16x2xf32>
    %162 = arith.addf %58, %59 : vector<16x2xf32>
    %163 = arith.addf %60, %61 : vector<16x2xf32>
    %164 = arith.addf %62, %63 : vector<16x2xf32>
    %165 = arith.addf %64, %65 : vector<16x2xf32>
    %166 = arith.addf %66, %67 : vector<16x2xf32>
    %167 = arith.addf %68, %69 : vector<16x2xf32>
    %168 = arith.addf %70, %71 : vector<16x2xf32>
    %169 = arith.addf %72, %73 : vector<16x2xf32>
    %170 = arith.addf %74, %75 : vector<16x2xf32>
    %171 = arith.addf %76, %77 : vector<16x2xf32>
    %172 = arith.addf %78, %79 : vector<16x2xf32>
    %173 = arith.addf %80, %81 : vector<16x2xf32>
    %174 = arith.addf %82, %83 : vector<16x2xf32>
    %175 = arith.addf %84, %85 : vector<16x2xf32>
    %176 = arith.addf %86, %87 : vector<16x2xf32>
    %177 = arith.addf %88, %89 : vector<16x2xf32>
    %178 = arith.addf %90, %91 : vector<16x2xf32>
    %179 = arith.addf %92, %93 : vector<16x2xf32>
    %180 = arith.addf %94, %95 : vector<16x2xf32>
    %181 = arith.addf %96, %97 : vector<16x2xf32>
    %182 = arith.addf %98, %99 : vector<16x2xf32>
    %183 = arith.addf %100, %101 : vector<16x2xf32>
    %184 = arith.addf %102, %103 : vector<16x2xf32>
    %185 = arith.addf %104, %105 : vector<16x2xf32>
    %186 = arith.addf %106, %107 : vector<16x2xf32>
    %187 = arith.addf %108, %109 : vector<16x2xf32>
    %188 = arith.addf %110, %111 : vector<16x2xf32>
    %189 = arith.addf %112, %113 : vector<16x2xf32>
    %190 = arith.addf %114, %115 : vector<16x2xf32>
    %191 = arith.addf %116, %117 : vector<16x2xf32>
    %192 = arith.addf %118, %119 : vector<16x2xf32>
    %193 = arith.addf %120, %121 : vector<16x2xf32>
    %194 = arith.addf %122, %123 : vector<16x2xf32>
    %195 = arith.addf %124, %125 : vector<16x2xf32>
    %196 = arith.addf %126, %127 : vector<16x2xf32>
    %197 = arith.addf %128, %129 : vector<16x2xf32>
    %198 = arith.addf %130, %131 : vector<16x2xf32>
    %199 = arith.addf %132, %133 : vector<16x2xf32>
    %200 = arith.addf %134, %135 : vector<16x2xf32>
    %201 = arith.addf %136, %137 : vector<16x2xf32>
    %202 = arith.addf %138, %139 : vector<16x2xf32>
    %203 = arith.addf %140, %141 : vector<16x2xf32>
    %204 = arith.addf %142, %143 : vector<16x2xf32>
    %205 = arith.addf %144, %145 : vector<16x2xf32>
    %206 = arith.addf %146, %147 : vector<16x2xf32>
    %207 = arith.addf %148, %149 : vector<16x2xf32>
    %208 = arith.addf %150, %151 : vector<16x2xf32>
    %209 = arith.addf %152, %153 : vector<16x2xf32>
    %210 = arith.addf %154, %155 : vector<16x2xf32>
    %211 = arith.addf %156, %157 : vector<16x2xf32>
    %212 = arith.addf %158, %159 : vector<16x2xf32>
    %213 = arith.addf %160, %161 : vector<16x2xf32>
    %214 = arith.addf %162, %163 : vector<16x2xf32>
    %215 = arith.addf %164, %165 : vector<16x2xf32>
    %216 = arith.addf %166, %167 : vector<16x2xf32>
    %217 = arith.addf %168, %169 : vector<16x2xf32>
    %218 = arith.addf %170, %171 : vector<16x2xf32>
    %219 = arith.addf %172, %173 : vector<16x2xf32>
    %220 = arith.addf %174, %175 : vector<16x2xf32>
    %221 = arith.addf %176, %177 : vector<16x2xf32>
    %222 = arith.addf %178, %179 : vector<16x2xf32>
    %223 = arith.addf %180, %181 : vector<16x2xf32>
    %224 = arith.addf %182, %183 : vector<16x2xf32>
    %225 = arith.addf %184, %185 : vector<16x2xf32>
    %226 = arith.addf %186, %187 : vector<16x2xf32>
    %227 = arith.addf %188, %189 : vector<16x2xf32>
    %228 = arith.addf %190, %191 : vector<16x2xf32>
    %229 = arith.addf %192, %193 : vector<16x2xf32>
    %230 = arith.addf %194, %195 : vector<16x2xf32>
    %231 = arith.addf %196, %197 : vector<16x2xf32>
    %232 = arith.addf %198, %199 : vector<16x2xf32>
    %233 = arith.addf %200, %201 : vector<16x2xf32>
    %234 = arith.addf %202, %203 : vector<16x2xf32>
    %235 = arith.addf %204, %205 : vector<16x2xf32>
    %236 = arith.addf %206, %207 : vector<16x2xf32>
    %237 = arith.addf %208, %209 : vector<16x2xf32>
    %238 = arith.addf %210, %211 : vector<16x2xf32>
    %239 = arith.addf %212, %213 : vector<16x2xf32>
    %240 = arith.addf %214, %215 : vector<16x2xf32>
    %241 = arith.addf %216, %217 : vector<16x2xf32>
    %242 = arith.addf %218, %219 : vector<16x2xf32>
    %243 = arith.addf %220, %221 : vector<16x2xf32>
    %244 = arith.addf %222, %223 : vector<16x2xf32>
    %245 = arith.addf %224, %225 : vector<16x2xf32>
    %246 = arith.addf %226, %227 : vector<16x2xf32>
    %247 = arith.addf %228, %229 : vector<16x2xf32>
    %248 = arith.addf %230, %231 : vector<16x2xf32>
    %249 = arith.addf %232, %233 : vector<16x2xf32>
    %250 = arith.addf %234, %235 : vector<16x2xf32>
    %251 = arith.addf %236, %237 : vector<16x2xf32>
    %252 = arith.addf %238, %239 : vector<16x2xf32>
    %253 = arith.addf %240, %241 : vector<16x2xf32>
    %254 = arith.addf %242, %243 : vector<16x2xf32>
    %255 = arith.addf %244, %245 : vector<16x2xf32>
    %256 = arith.addf %246, %247 : vector<16x2xf32>
    %257 = arith.addf %248, %249 : vector<16x2xf32>
    %258 = arith.addf %250, %251 : vector<16x2xf32>
    %259 = arith.addf %252, %253 : vector<16x2xf32>
    %260 = arith.addf %254, %255 : vector<16x2xf32>
    %261 = arith.addf %256, %257 : vector<16x2xf32>
    %262 = arith.addf %258, %259 : vector<16x2xf32>
    %263 = arith.addf %260, %261 : vector<16x2xf32>
    %264 = arith.addf %262, %263 : vector<16x2xf32>
    %c0_3 = arith.constant 0 : index
    %c0_4 = arith.constant 0 : index
    %265 = vector.load %arg4[%c0_3, %c0_4] : memref<24x2xf32, #tpu.memory_space<vmem>>, vector<16x2xf32>
    tpu.vector_store %arg4[%c0_3, %c0_4], %264 {strides = array<i32>} : memref<24x2xf32, #tpu.memory_space<vmem>>, vector<16x2xf32>,
    %c0_5 = arith.constant 0 : index
    %c0_6 = arith.constant 0 : index
    %266 = vector.load %arg3[%c0_5, %c0_6] : memref<128x8xbf16, #tpu.memory_space<vmem>>, vector<128x8xbf16>
    %267 = vector.shape_cast %0 : vector<8x256xf32> to vector<8x1x256xf32>
    %268 = vector.shape_cast %9 : vector<16x256xf32> to vector<1x16x256xf32>
    %269 = vector.broadcast %267 : vector<8x1x256xf32> to vector<8x16x256xf32>
    %270 = vector.broadcast %268 : vector<1x16x256xf32> to vector<8x16x256xf32>
    %271 = arith.mulf %269, %270 : vector<8x16x256xf32>
    %272 = vector.shape_cast %271 : vector<8x16x256xf32> to vector<128x256xf32>
    %273 = arith.truncf %272 : vector<128x256xf32> to vector<128x256xbf16>
    %cst_7 = arith.constant dense<0.000000e+00> : vector<8x256xf32>
    %274 = tpu.matmul %266, %273, %cst_7 {dimension_numbers = #tpu.dot_dimension_numbers<[0], [0], [1], [1], [0, 1, 1, 1], [], []>} : vector<128x8xbf16>, vector<128x256xbf16>, vector<8x256xf32> -> vector<8x256xf32>
    %275 = vector.extract_strided_slice %274 {offsets = [0, 0], sizes = [8, 2], strides = [1, 1]} : vector<8x256xf32> to vector<8x2xf32>
    %276 = vector.extract_strided_slice %274 {offsets = [0, 2], sizes = [8, 2], strides = [1, 1]} : vector<8x256xf32> to vector<8x2xf32>
    %277 = vector.extract_strided_slice %274 {offsets = [0, 4], sizes = [8, 2], strides = [1, 1]} : vector<8x256xf32> to vector<8x2xf32>
    %278 = vector.extract_strided_slice %274 {offsets = [0, 6], sizes = [8, 2], strides = [1, 1]} : vector<8x256xf32> to vector<8x2xf32>
    %279 = vector.extract_strided_slice %274 {offsets = [0, 8], sizes = [8, 2], strides = [1, 1]} : vector<8x256xf32> to vector<8x2xf32>
    %280 = vector.extract_strided_slice %274 {offsets = [0, 10], sizes = [8, 2], strides = [1, 1]} : vector<8x256xf32> to vector<8x2xf32>
    %281 = vector.extract_strided_slice %274 {offsets = [0, 12], sizes = [8, 2], strides = [1, 1]} : vector<8x256xf32> to vector<8x2xf32>
    %282 = vector.extract_strided_slice %274 {offsets = [0, 14], sizes = [8, 2], strides = [1, 1]} : vector<8x256xf32> to vector<8x2xf32>
    %283 = vector.extract_strided_slice %274 {offsets = [0, 16], sizes = [8, 2], strides = [1, 1]} : vector<8x256xf32> to vector<8x2xf32>
    %284 = vector.extract_strided_slice %274 {offsets = [0, 18], sizes = [8, 2], strides = [1, 1]} : vector<8x256xf32> to vector<8x2xf32>
    %285 = vector.extract_strided_slice %274 {offsets = [0, 20], sizes = [8, 2], strides = [1, 1]} : vector<8x256xf32> to vector<8x2xf32>
    %286 = vector.extract_strided_slice %274 {offsets = [0, 22], sizes = [8, 2], strides = [1, 1]} : vector<8x256xf32> to vector<8x2xf32>
    %287 = vector.extract_strided_slice %274 {offsets = [0, 24], sizes = [8, 2], strides = [1, 1]} : vector<8x256xf32> to vector<8x2xf32>
    %288 = vector.extract_strided_slice %274 {offsets = [0, 26], sizes = [8, 2], strides = [1, 1]} : vector<8x256xf32> to vector<8x2xf32>
    %289 = vector.extract_strided_slice %274 {offsets = [0, 28], sizes = [8, 2], strides = [1, 1]} : vector<8x256xf32> to vector<8x2xf32>
    %290 = vector.extract_strided_slice %274 {offsets = [0, 30], sizes = [8, 2], strides = [1, 1]} : vector<8x256xf32> to vector<8x2xf32>
    %291 = vector.extract_strided_slice %274 {offsets = [0, 32], sizes = [8, 2], strides = [1, 1]} : vector<8x256xf32> to vector<8x2xf32>
    %292 = vector.extract_strided_slice %274 {offsets = [0, 34], sizes = [8, 2], strides = [1, 1]} : vector<8x256xf32> to vector<8x2xf32>
    %293 = vector.extract_strided_slice %274 {offsets = [0, 36], sizes = [8, 2], strides = [1, 1]} : vector<8x256xf32> to vector<8x2xf32>
    %294 = vector.extract_strided_slice %274 {offsets = [0, 38], sizes = [8, 2], strides = [1, 1]} : vector<8x256xf32> to vector<8x2xf32>
    %295 = vector.extract_strided_slice %274 {offsets = [0, 40], sizes = [8, 2], strides = [1, 1]} : vector<8x256xf32> to vector<8x2xf32>
    %296 = vector.extract_strided_slice %274 {offsets = [0, 42], sizes = [8, 2], strides = [1, 1]} : vector<8x256xf32> to vector<8x2xf32>
    %297 = vector.extract_strided_slice %274 {offsets = [0, 44], sizes = [8, 2], strides = [1, 1]} : vector<8x256xf32> to vector<8x2xf32>
    %298 = vector.extract_strided_slice %274 {offsets = [0, 46], sizes = [8, 2], strides = [1, 1]} : vector<8x256xf32> to vector<8x2xf32>
    %299 = vector.extract_strided_slice %274 {offsets = [0, 48], sizes = [8, 2], strides = [1, 1]} : vector<8x256xf32> to vector<8x2xf32>
    %300 = vector.extract_strided_slice %274 {offsets = [0, 50], sizes = [8, 2], strides = [1, 1]} : vector<8x256xf32> to vector<8x2xf32>
    %301 = vector.extract_strided_slice %274 {offsets = [0, 52], sizes = [8, 2], strides = [1, 1]} : vector<8x256xf32> to vector<8x2xf32>
    %302 = vector.extract_strided_slice %274 {offsets = [0, 54], sizes = [8, 2], strides = [1, 1]} : vector<8x256xf32> to vector<8x2xf32>
    %303 = vector.extract_strided_slice %274 {offsets = [0, 56], sizes = [8, 2], strides = [1, 1]} : vector<8x256xf32> to vector<8x2xf32>
    %304 = vector.extract_strided_slice %274 {offsets = [0, 58], sizes = [8, 2], strides = [1, 1]} : vector<8x256xf32> to vector<8x2xf32>
    %305 = vector.extract_strided_slice %274 {offsets = [0, 60], sizes = [8, 2], strides = [1, 1]} : vector<8x256xf32> to vector<8x2xf32>
    %306 = vector.extract_strided_slice %274 {offsets = [0, 62], sizes = [8, 2], strides = [1, 1]} : vector<8x256xf32> to vector<8x2xf32>
    %307 = vector.extract_strided_slice %274 {offsets = [0, 64], sizes = [8, 2], strides = [1, 1]} : vector<8x256xf32> to vector<8x2xf32>
    %308 = vector.extract_strided_slice %274 {offsets = [0, 66], sizes = [8, 2], strides = [1, 1]} : vector<8x256xf32> to vector<8x2xf32>
    %309 = vector.extract_strided_slice %274 {offsets = [0, 68], sizes = [8, 2], strides = [1, 1]} : vector<8x256xf32> to vector<8x2xf32>
    %310 = vector.extract_strided_slice %274 {offsets = [0, 70], sizes = [8, 2], strides = [1, 1]} : vector<8x256xf32> to vector<8x2xf32>
    %311 = vector.extract_strided_slice %274 {offsets = [0, 72], sizes = [8, 2], strides = [1, 1]} : vector<8x256xf32> to vector<8x2xf32>
    %312 = vector.extract_strided_slice %274 {offsets = [0, 74], sizes = [8, 2], strides = [1, 1]} : vector<8x256xf32> to vector<8x2xf32>
    %313 = vector.extract_strided_slice %274 {offsets = [0, 76], sizes = [8, 2], strides = [1, 1]} : vector<8x256xf32> to vector<8x2xf32>
    %314 = vector.extract_strided_slice %274 {offsets = [0, 78], sizes = [8, 2], strides = [1, 1]} : vector<8x256xf32> to vector<8x2xf32>
    %315 = vector.extract_strided_slice %274 {offsets = [0, 80], sizes = [8, 2], strides = [1, 1]} : vector<8x256xf32> to vector<8x2xf32>
    %316 = vector.extract_strided_slice %274 {offsets = [0, 82], sizes = [8, 2], strides = [1, 1]} : vector<8x256xf32> to vector<8x2xf32>
    %317 = vector.extract_strided_slice %274 {offsets = [0, 84], sizes = [8, 2], strides = [1, 1]} : vector<8x256xf32> to vector<8x2xf32>
    %318 = vector.extract_strided_slice %274 {offsets = [0, 86], sizes = [8, 2], strides = [1, 1]} : vector<8x256xf32> to vector<8x2xf32>
    %319 = vector.extract_strided_slice %274 {offsets = [0, 88], sizes = [8, 2], strides = [1, 1]} : vector<8x256xf32> to vector<8x2xf32>
    %320 = vector.extract_strided_slice %274 {offsets = [0, 90], sizes = [8, 2], strides = [1, 1]} : vector<8x256xf32> to vector<8x2xf32>
    %321 = vector.extract_strided_slice %274 {offsets = [0, 92], sizes = [8, 2], strides = [1, 1]} : vector<8x256xf32> to vector<8x2xf32>
    %322 = vector.extract_strided_slice %274 {offsets = [0, 94], sizes = [8, 2], strides = [1, 1]} : vector<8x256xf32> to vector<8x2xf32>
    %323 = vector.extract_strided_slice %274 {offsets = [0, 96], sizes = [8, 2], strides = [1, 1]} : vector<8x256xf32> to vector<8x2xf32>
    %324 = vector.extract_strided_slice %274 {offsets = [0, 98], sizes = [8, 2], strides = [1, 1]} : vector<8x256xf32> to vector<8x2xf32>
    %325 = vector.extract_strided_slice %274 {offsets = [0, 100], sizes = [8, 2], strides = [1, 1]} : vector<8x256xf32> to vector<8x2xf32>
    %326 = vector.extract_strided_slice %274 {offsets = [0, 102], sizes = [8, 2], strides = [1, 1]} : vector<8x256xf32> to vector<8x2xf32>
    %327 = vector.extract_strided_slice %274 {offsets = [0, 104], sizes = [8, 2], strides = [1, 1]} : vector<8x256xf32> to vector<8x2xf32>
    %328 = vector.extract_strided_slice %274 {offsets = [0, 106], sizes = [8, 2], strides = [1, 1]} : vector<8x256xf32> to vector<8x2xf32>
    %329 = vector.extract_strided_slice %274 {offsets = [0, 108], sizes = [8, 2], strides = [1, 1]} : vector<8x256xf32> to vector<8x2xf32>
    %330 = vector.extract_strided_slice %274 {offsets = [0, 110], sizes = [8, 2], strides = [1, 1]} : vector<8x256xf32> to vector<8x2xf32>
    %331 = vector.extract_strided_slice %274 {offsets = [0, 112], sizes = [8, 2], strides = [1, 1]} : vector<8x256xf32> to vector<8x2xf32>
    %332 = vector.extract_strided_slice %274 {offsets = [0, 114], sizes = [8, 2], strides = [1, 1]} : vector<8x256xf32> to vector<8x2xf32>
    %333 = vector.extract_strided_slice %274 {offsets = [0, 116], sizes = [8, 2], strides = [1, 1]} : vector<8x256xf32> to vector<8x2xf32>
    %334 = vector.extract_strided_slice %274 {offsets = [0, 118], sizes = [8, 2], strides = [1, 1]} : vector<8x256xf32> to vector<8x2xf32>
    %335 = vector.extract_strided_slice %274 {offsets = [0, 120], sizes = [8, 2], strides = [1, 1]} : vector<8x256xf32> to vector<8x2xf32>
    %336 = vector.extract_strided_slice %274 {offsets = [0, 122], sizes = [8, 2], strides = [1, 1]} : vector<8x256xf32> to vector<8x2xf32>
    %337 = vector.extract_strided_slice %274 {offsets = [0, 124], sizes = [8, 2], strides = [1, 1]} : vector<8x256xf32> to vector<8x2xf32>
    %338 = vector.extract_strided_slice %274 {offsets = [0, 126], sizes = [8, 2], strides = [1, 1]} : vector<8x256xf32> to vector<8x2xf32>
    %339 = vector.extract_strided_slice %274 {offsets = [0, 128], sizes = [8, 2], strides = [1, 1]} : vector<8x256xf32> to vector<8x2xf32>
    %340 = vector.extract_strided_slice %274 {offsets = [0, 130], sizes = [8, 2], strides = [1, 1]} : vector<8x256xf32> to vector<8x2xf32>
    %341 = vector.extract_strided_slice %274 {offsets = [0, 132], sizes = [8, 2], strides = [1, 1]} : vector<8x256xf32> to vector<8x2xf32>
    %342 = vector.extract_strided_slice %274 {offsets = [0, 134], sizes = [8, 2], strides = [1, 1]} : vector<8x256xf32> to vector<8x2xf32>
    %343 = vector.extract_strided_slice %274 {offsets = [0, 136], sizes = [8, 2], strides = [1, 1]} : vector<8x256xf32> to vector<8x2xf32>
    %344 = vector.extract_strided_slice %274 {offsets = [0, 138], sizes = [8, 2], strides = [1, 1]} : vector<8x256xf32> to vector<8x2xf32>
    %345 = vector.extract_strided_slice %274 {offsets = [0, 140], sizes = [8, 2], strides = [1, 1]} : vector<8x256xf32> to vector<8x2xf32>
    %346 = vector.extract_strided_slice %274 {offsets = [0, 142], sizes = [8, 2], strides = [1, 1]} : vector<8x256xf32> to vector<8x2xf32>
    %347 = vector.extract_strided_slice %274 {offsets = [0, 144], sizes = [8, 2], strides = [1, 1]} : vector<8x256xf32> to vector<8x2xf32>
    %348 = vector.extract_strided_slice %274 {offsets = [0, 146], sizes = [8, 2], strides = [1, 1]} : vector<8x256xf32> to vector<8x2xf32>
    %349 = vector.extract_strided_slice %274 {offsets = [0, 148], sizes = [8, 2], strides = [1, 1]} : vector<8x256xf32> to vector<8x2xf32>
    %350 = vector.extract_strided_slice %274 {offsets = [0, 150], sizes = [8, 2], strides = [1, 1]} : vector<8x256xf32> to vector<8x2xf32>
    %351 = vector.extract_strided_slice %274 {offsets = [0, 152], sizes = [8, 2], strides = [1, 1]} : vector<8x256xf32> to vector<8x2xf32>
    %352 = vector.extract_strided_slice %274 {offsets = [0, 154], sizes = [8, 2], strides = [1, 1]} : vector<8x256xf32> to vector<8x2xf32>
    %353 = vector.extract_strided_slice %274 {offsets = [0, 156], sizes = [8, 2], strides = [1, 1]} : vector<8x256xf32> to vector<8x2xf32>
    %354 = vector.extract_strided_slice %274 {offsets = [0, 158], sizes = [8, 2], strides = [1, 1]} : vector<8x256xf32> to vector<8x2xf32>
    %355 = vector.extract_strided_slice %274 {offsets = [0, 160], sizes = [8, 2], strides = [1, 1]} : vector<8x256xf32> to vector<8x2xf32>
    %356 = vector.extract_strided_slice %274 {offsets = [0, 162], sizes = [8, 2], strides = [1, 1]} : vector<8x256xf32> to vector<8x2xf32>
    %357 = vector.extract_strided_slice %274 {offsets = [0, 164], sizes = [8, 2], strides = [1, 1]} : vector<8x256xf32> to vector<8x2xf32>
    %358 = vector.extract_strided_slice %274 {offsets = [0, 166], sizes = [8, 2], strides = [1, 1]} : vector<8x256xf32> to vector<8x2xf32>
    %359 = vector.extract_strided_slice %274 {offsets = [0, 168], sizes = [8, 2], strides = [1, 1]} : vector<8x256xf32> to vector<8x2xf32>
    %360 = vector.extract_strided_slice %274 {offsets = [0, 170], sizes = [8, 2], strides = [1, 1]} : vector<8x256xf32> to vector<8x2xf32>
    %361 = vector.extract_strided_slice %274 {offsets = [0, 172], sizes = [8, 2], strides = [1, 1]} : vector<8x256xf32> to vector<8x2xf32>
    %362 = vector.extract_strided_slice %274 {offsets = [0, 174], sizes = [8, 2], strides = [1, 1]} : vector<8x256xf32> to vector<8x2xf32>
    %363 = vector.extract_strided_slice %274 {offsets = [0, 176], sizes = [8, 2], strides = [1, 1]} : vector<8x256xf32> to vector<8x2xf32>
    %364 = vector.extract_strided_slice %274 {offsets = [0, 178], sizes = [8, 2], strides = [1, 1]} : vector<8x256xf32> to vector<8x2xf32>
    %365 = vector.extract_strided_slice %274 {offsets = [0, 180], sizes = [8, 2], strides = [1, 1]} : vector<8x256xf32> to vector<8x2xf32>
    %366 = vector.extract_strided_slice %274 {offsets = [0, 182], sizes = [8, 2], strides = [1, 1]} : vector<8x256xf32> to vector<8x2xf32>
    %367 = vector.extract_strided_slice %274 {offsets = [0, 184], sizes = [8, 2], strides = [1, 1]} : vector<8x256xf32> to vector<8x2xf32>
    %368 = vector.extract_strided_slice %274 {offsets = [0, 186], sizes = [8, 2], strides = [1, 1]} : vector<8x256xf32> to vector<8x2xf32>
    %369 = vector.extract_strided_slice %274 {offsets = [0, 188], sizes = [8, 2], strides = [1, 1]} : vector<8x256xf32> to vector<8x2xf32>
    %370 = vector.extract_strided_slice %274 {offsets = [0, 190], sizes = [8, 2], strides = [1, 1]} : vector<8x256xf32> to vector<8x2xf32>
    %371 = vector.extract_strided_slice %274 {offsets = [0, 192], sizes = [8, 2], strides = [1, 1]} : vector<8x256xf32> to vector<8x2xf32>
    %372 = vector.extract_strided_slice %274 {offsets = [0, 194], sizes = [8, 2], strides = [1, 1]} : vector<8x256xf32> to vector<8x2xf32>
    %373 = vector.extract_strided_slice %274 {offsets = [0, 196], sizes = [8, 2], strides = [1, 1]} : vector<8x256xf32> to vector<8x2xf32>
    %374 = vector.extract_strided_slice %274 {offsets = [0, 198], sizes = [8, 2], strides = [1, 1]} : vector<8x256xf32> to vector<8x2xf32>
    %375 = vector.extract_strided_slice %274 {offsets = [0, 200], sizes = [8, 2], strides = [1, 1]} : vector<8x256xf32> to vector<8x2xf32>
    %376 = vector.extract_strided_slice %274 {offsets = [0, 202], sizes = [8, 2], strides = [1, 1]} : vector<8x256xf32> to vector<8x2xf32>
    %377 = vector.extract_strided_slice %274 {offsets = [0, 204], sizes = [8, 2], strides = [1, 1]} : vector<8x256xf32> to vector<8x2xf32>
    %378 = vector.extract_strided_slice %274 {offsets = [0, 206], sizes = [8, 2], strides = [1, 1]} : vector<8x256xf32> to vector<8x2xf32>
    %379 = vector.extract_strided_slice %274 {offsets = [0, 208], sizes = [8, 2], strides = [1, 1]} : vector<8x256xf32> to vector<8x2xf32>
    %380 = vector.extract_strided_slice %274 {offsets = [0, 210], sizes = [8, 2], strides = [1, 1]} : vector<8x256xf32> to vector<8x2xf32>
    %381 = vector.extract_strided_slice %274 {offsets = [0, 212], sizes = [8, 2], strides = [1, 1]} : vector<8x256xf32> to vector<8x2xf32>
    %382 = vector.extract_strided_slice %274 {offsets = [0, 214], sizes = [8, 2], strides = [1, 1]} : vector<8x256xf32> to vector<8x2xf32>
    %383 = vector.extract_strided_slice %274 {offsets = [0, 216], sizes = [8, 2], strides = [1, 1]} : vector<8x256xf32> to vector<8x2xf32>
    %384 = vector.extract_strided_slice %274 {offsets = [0, 218], sizes = [8, 2], strides = [1, 1]} : vector<8x256xf32> to vector<8x2xf32>
    %385 = vector.extract_strided_slice %274 {offsets = [0, 220], sizes = [8, 2], strides = [1, 1]} : vector<8x256xf32> to vector<8x2xf32>
    %386 = vector.extract_strided_slice %274 {offsets = [0, 222], sizes = [8, 2], strides = [1, 1]} : vector<8x256xf32> to vector<8x2xf32>
    %387 = vector.extract_strided_slice %274 {offsets = [0, 224], sizes = [8, 2], strides = [1, 1]} : vector<8x256xf32> to vector<8x2xf32>
    %388 = vector.extract_strided_slice %274 {offsets = [0, 226], sizes = [8, 2], strides = [1, 1]} : vector<8x256xf32> to vector<8x2xf32>
    %389 = vector.extract_strided_slice %274 {offsets = [0, 228], sizes = [8, 2], strides = [1, 1]} : vector<8x256xf32> to vector<8x2xf32>
    %390 = vector.extract_strided_slice %274 {offsets = [0, 230], sizes = [8, 2], strides = [1, 1]} : vector<8x256xf32> to vector<8x2xf32>
    %391 = vector.extract_strided_slice %274 {offsets = [0, 232], sizes = [8, 2], strides = [1, 1]} : vector<8x256xf32> to vector<8x2xf32>
    %392 = vector.extract_strided_slice %274 {offsets = [0, 234], sizes = [8, 2], strides = [1, 1]} : vector<8x256xf32> to vector<8x2xf32>
    %393 = vector.extract_strided_slice %274 {offsets = [0, 236], sizes = [8, 2], strides = [1, 1]} : vector<8x256xf32> to vector<8x2xf32>
    %394 = vector.extract_strided_slice %274 {offsets = [0, 238], sizes = [8, 2], strides = [1, 1]} : vector<8x256xf32> to vector<8x2xf32>
    %395 = vector.extract_strided_slice %274 {offsets = [0, 240], sizes = [8, 2], strides = [1, 1]} : vector<8x256xf32> to vector<8x2xf32>
    %396 = vector.extract_strided_slice %274 {offsets = [0, 242], sizes = [8, 2], strides = [1, 1]} : vector<8x256xf32> to vector<8x2xf32>
    %397 = vector.extract_strided_slice %274 {offsets = [0, 244], sizes = [8, 2], strides = [1, 1]} : vector<8x256xf32> to vector<8x2xf32>
    %398 = vector.extract_strided_slice %274 {offsets = [0, 246], sizes = [8, 2], strides = [1, 1]} : vector<8x256xf32> to vector<8x2xf32>
    %399 = vector.extract_strided_slice %274 {offsets = [0, 248], sizes = [8, 2], strides = [1, 1]} : vector<8x256xf32> to vector<8x2xf32>
    %400 = vector.extract_strided_slice %274 {offsets = [0, 250], sizes = [8, 2], strides = [1, 1]} : vector<8x256xf32> to vector<8x2xf32>
    %401 = vector.extract_strided_slice %274 {offsets = [0, 252], sizes = [8, 2], strides = [1, 1]} : vector<8x256xf32> to vector<8x2xf32>
    %402 = vector.extract_strided_slice %274 {offsets = [0, 254], sizes = [8, 2], strides = [1, 1]} : vector<8x256xf32> to vector<8x2xf32>
    %403 = arith.addf %275, %276 : vector<8x2xf32>
    %404 = arith.addf %277, %278 : vector<8x2xf32>
    %405 = arith.addf %279, %280 : vector<8x2xf32>
    %406 = arith.addf %281, %282 : vector<8x2xf32>
    %407 = arith.addf %283, %284 : vector<8x2xf32>
    %408 = arith.addf %285, %286 : vector<8x2xf32>
    %409 = arith.addf %287, %288 : vector<8x2xf32>
    %410 = arith.addf %289, %290 : vector<8x2xf32>
    %411 = arith.addf %291, %292 : vector<8x2xf32>
    %412 = arith.addf %293, %294 : vector<8x2xf32>
    %413 = arith.addf %295, %296 : vector<8x2xf32>
    %414 = arith.addf %297, %298 : vector<8x2xf32>
    %415 = arith.addf %299, %300 : vector<8x2xf32>
    %416 = arith.addf %301, %302 : vector<8x2xf32>
    %417 = arith.addf %303, %304 : vector<8x2xf32>
    %418 = arith.addf %305, %306 : vector<8x2xf32>
    %419 = arith.addf %307, %308 : vector<8x2xf32>
    %420 = arith.addf %309, %310 : vector<8x2xf32>
    %421 = arith.addf %311, %312 : vector<8x2xf32>
    %422 = arith.addf %313, %314 : vector<8x2xf32>
    %423 = arith.addf %315, %316 : vector<8x2xf32>
    %424 = arith.addf %317, %318 : vector<8x2xf32>
    %425 = arith.addf %319, %320 : vector<8x2xf32>
    %426 = arith.addf %321, %322 : vector<8x2xf32>
    %427 = arith.addf %323, %324 : vector<8x2xf32>
    %428 = arith.addf %325, %326 : vector<8x2xf32>
    %429 = arith.addf %327, %328 : vector<8x2xf32>
    %430 = arith.addf %329, %330 : vector<8x2xf32>
    %431 = arith.addf %331, %332 : vector<8x2xf32>
    %432 = arith.addf %333, %334 : vector<8x2xf32>
    %433 = arith.addf %335, %336 : vector<8x2xf32>
    %434 = arith.addf %337, %338 : vector<8x2xf32>
    %435 = arith.addf %339, %340 : vector<8x2xf32>
    %436 = arith.addf %341, %342 : vector<8x2xf32>
    %437 = arith.addf %343, %344 : vector<8x2xf32>
    %438 = arith.addf %345, %346 : vector<8x2xf32>
    %439 = arith.addf %347, %348 : vector<8x2xf32>
    %440 = arith.addf %349, %350 : vector<8x2xf32>
    %441 = arith.addf %351, %352 : vector<8x2xf32>
    %442 = arith.addf %353, %354 : vector<8x2xf32>
    %443 = arith.addf %355, %356 : vector<8x2xf32>
    %444 = arith.addf %357, %358 : vector<8x2xf32>
    %445 = arith.addf %359, %360 : vector<8x2xf32>
    %446 = arith.addf %361, %362 : vector<8x2xf32>
    %447 = arith.addf %363, %364 : vector<8x2xf32>
    %448 = arith.addf %365, %366 : vector<8x2xf32>
    %449 = arith.addf %367, %368 : vector<8x2xf32>
    %450 = arith.addf %369, %370 : vector<8x2xf32>
    %451 = arith.addf %371, %372 : vector<8x2xf32>
    %452 = arith.addf %373, %374 : vector<8x2xf32>
    %453 = arith.addf %375, %376 : vector<8x2xf32>
    %454 = arith.addf %377, %378 : vector<8x2xf32>
    %455 = arith.addf %379, %380 : vector<8x2xf32>
    %456 = arith.addf %381, %382 : vector<8x2xf32>
    %457 = arith.addf %383, %384 : vector<8x2xf32>
    %458 = arith.addf %385, %386 : vector<8x2xf32>
    %459 = arith.addf %387, %388 : vector<8x2xf32>
    %460 = arith.addf %389, %390 : vector<8x2xf32>
    %461 = arith.addf %391, %392 : vector<8x2xf32>
    %462 = arith.addf %393, %394 : vector<8x2xf32>
    %463 = arith.addf %395, %396 : vector<8x2xf32>
    %464 = arith.addf %397, %398 : vector<8x2xf32>
    %465 = arith.addf %399, %400 : vector<8x2xf32>
    %466 = arith.addf %401, %402 : vector<8x2xf32>
    %467 = arith.addf %403, %404 : vector<8x2xf32>
    %468 = arith.addf %405, %406 : vector<8x2xf32>
    %469 = arith.addf %407, %408 : vector<8x2xf32>
    %470 = arith.addf %409, %410 : vector<8x2xf32>
    %471 = arith.addf %411, %412 : vector<8x2xf32>
    %472 = arith.addf %413, %414 : vector<8x2xf32>
    %473 = arith.addf %415, %416 : vector<8x2xf32>
    %474 = arith.addf %417, %418 : vector<8x2xf32>
    %475 = arith.addf %419, %420 : vector<8x2xf32>
    %476 = arith.addf %421, %422 : vector<8x2xf32>
    %477 = arith.addf %423, %424 : vector<8x2xf32>
    %478 = arith.addf %425, %426 : vector<8x2xf32>
    %479 = arith.addf %427, %428 : vector<8x2xf32>
    %480 = arith.addf %429, %430 : vector<8x2xf32>
    %481 = arith.addf %431, %432 : vector<8x2xf32>
    %482 = arith.addf %433, %434 : vector<8x2xf32>
    %483 = arith.addf %435, %436 : vector<8x2xf32>
    %484 = arith.addf %437, %438 : vector<8x2xf32>
    %485 = arith.addf %439, %440 : vector<8x2xf32>
    %486 = arith.addf %441, %442 : vector<8x2xf32>
    %487 = arith.addf %443, %444 : vector<8x2xf32>
    %488 = arith.addf %445, %446 : vector<8x2xf32>
    %489 = arith.addf %447, %448 : vector<8x2xf32>
    %490 = arith.addf %449, %450 : vector<8x2xf32>
    %491 = arith.addf %451, %452 : vector<8x2xf32>
    %492 = arith.addf %453, %454 : vector<8x2xf32>
    %493 = arith.addf %455, %456 : vector<8x2xf32>
    %494 = arith.addf %457, %458 : vector<8x2xf32>
    %495 = arith.addf %459, %460 : vector<8x2xf32>
    %496 = arith.addf %461, %462 : vector<8x2xf32>
    %497 = arith.addf %463, %464 : vector<8x2xf32>
    %498 = arith.addf %465, %466 : vector<8x2xf32>
    %499 = arith.addf %467, %468 : vector<8x2xf32>
    %500 = arith.addf %469, %470 : vector<8x2xf32>
    %501 = arith.addf %471, %472 : vector<8x2xf32>
    %502 = arith.addf %473, %474 : vector<8x2xf32>
    %503 = arith.addf %475, %476 : vector<8x2xf32>
    %504 = arith.addf %477, %478 : vector<8x2xf32>
    %505 = arith.addf %479, %480 : vector<8x2xf32>
    %506 = arith.addf %481, %482 : vector<8x2xf32>
    %507 = arith.addf %483, %484 : vector<8x2xf32>
    %508 = arith.addf %485, %486 : vector<8x2xf32>
    %509 = arith.addf %487, %488 : vector<8x2xf32>
    %510 = arith.addf %489, %490 : vector<8x2xf32>
    %511 = arith.addf %491, %492 : vector<8x2xf32>
    %512 = arith.addf %493, %494 : vector<8x2xf32>
    %513 = arith.addf %495, %496 : vector<8x2xf32>
    %514 = arith.addf %497, %498 : vector<8x2xf32>
    %515 = arith.addf %499, %500 : vector<8x2xf32>
    %516 = arith.addf %501, %502 : vector<8x2xf32>
    %517 = arith.addf %503, %504 : vector<8x2xf32>
    %518 = arith.addf %505, %506 : vector<8x2xf32>
    %519 = arith.addf %507, %508 : vector<8x2xf32>
    %520 = arith.addf %509, %510 : vector<8x2xf32>
    %521 = arith.addf %511, %512 : vector<8x2xf32>
    %522 = arith.addf %513, %514 : vector<8x2xf32>
    %523 = arith.addf %515, %516 : vector<8x2xf32>
    %524 = arith.addf %517, %518 : vector<8x2xf32>
    %525 = arith.addf %519, %520 : vector<8x2xf32>
    %526 = arith.addf %521, %522 : vector<8x2xf32>
    %527 = arith.addf %523, %524 : vector<8x2xf32>
    %528 = arith.addf %525, %526 : vector<8x2xf32>
    %529 = arith.addf %527, %528 : vector<8x2xf32>
    %c16 = arith.constant 16 : index
    %c0_8 = arith.constant 0 : index
    %530 = vector.load %arg4[%c16, %c0_8] : memref<24x2xf32, #tpu.memory_space<vmem>>, vector<8x2xf32>
    tpu.vector_store %arg4[%c16, %c0_8], %529 {strides = array<i32>} : memref<24x2xf32, #tpu.memory_space<vmem>>, vector<8x2xf32>,
    return
  }
  func.func @transform_0(%arg0: i32) -> (i32, i32) {
    %c0_i32 = arith.constant 0 : i32
    %c0_i32_0 = arith.constant 0 : i32
    return %c0_i32, %arg0 : i32, i32
  }
  func.func @transform_1(%arg0: i32) -> (i32, i32) {
    %c0_i32 = arith.constant 0 : i32
    %c0_i32_0 = arith.constant 0 : i32
    %c0_i32_1 = arith.constant 0 : i32
    return %c0_i32, %c0_i32_0 : i32, i32
  }
  func.func @transform_2(%arg0: i32) -> (i32, i32) {
    %c0_i32 = arith.constant 0 : i32
    %c0_i32_0 = arith.constant 0 : i32
    %c0_i32_1 = arith.constant 0 : i32
    return %c0_i32, %c0_i32_0 : i32, i32
  }
  func.func @transform_3(%arg0: i32) -> (i32, i32) {
    %c0_i32 = arith.constant 0 : i32
    %c0_i32_0 = arith.constant 0 : i32
    return %c0_i32, %arg0 : i32, i32
  }
}

</mosaic_0001>

<bundles_post_ra>
// kernel: tpu_custom_call.1
= control target key start
LH: loop header
LB: loop body
LE: loop exit
PB: predicated region body
PF: predicated region fallthrough
CT: control target
= control target key end

     0   :  { %vm45_vm0 = vcmask 1046534   ;;  %vm48_vm1 = vcmask 1046528   ;;  %vm39_vm2 = vcmask 1044484   ;;  %vm42_vm3 = vcmask 1045509   ;;  %s596_s11 = smov 126   ;;  %s598_s12 = smov 120   ;;  %s839_s1 = inlined_call_operand.vmem [shape: bf16[64,16], index: 1, kind: input, shape index: {}]   ;;  %s840_s0 = inlined_call_operand.vmem [shape: f32[8,256], index: 0, kind: input, shape index: {}]   ;;  %s841_s2 = inlined_call_operand.vmem [shape: bf16[128,8], index: 2, kind: input, shape index: {}]   ;;  %s842_s3 = inlined_call_operand.vmem [shape: f32[24,2], index: 3, kind: output, shape index: {}]  }
   0x1   :  { %v574_v0 = vld [vmem:[%s839_s1] sm:$0xff]  ;;  %v575_v1 = vld [vmem:[%s839_s1 + $0x8] sm:$0xff]  ;;  %vm33_vm4 = vcmask 1042434   ;;  %vm36_vm5 = vcmask 1043459   ;;  %vm28_vm6 = vcmask 1040384   ;;  %vm30_vm7 = vcmask 1041409  }
   0x2   :  { %131 = vxpose.xlu0.c.b16.start [1/4] (short) (narrow) %v574_v0, 16  ;;  %v631_v2 = vld [vmem:[%s840_s0] sm:$0xff]  ;;  %v636_v3 = vld [vmem:[%s840_s0 + $0x8] sm:$0xff]  ;;  %v576_v41 = vld [vmem:[%s839_s1 + $0x10] sm:$0xff]  ;;  %vm147_vm8 = vcmask 523264   ;;  %s599_s13 = smov 112  }
   0x3   :  { %v27_v4 = vrot.slane %v636_v3, 7  ;;  %v578_v5 = vld [vmem:[%s841_s2] sm:$0xff]  ;;  %v577_v62 = vld [vmem:[%s839_s1 + $0x18] sm:$0xff]  ;;  %v579_v63 = vld [vmem:[%s841_s2 + $0x8] sm:$0xff]  ;;  %s600_s14 = smov 96   ;;  %s601_s15 = smov 64  }
   0x4   :  { %416 = vxpose.xlu1.c.b16.start [1/8] (narrow) %v578_v5, 16  ;;  %v580_v0 = vld [vmem:[%s841_s2 + $0x10] sm:$0xff]  ;;  %vm301_vm9 = vcmask 15360  }
   0x5   :  { %v46_v6 = vsel %vm45_vm0, %v631_v2, %v27_v4  ;;  %v49_v7 = vsel %vm48_vm1, %v27_v4, %v631_v2  ;;  %v40_v8 = vsel %vm39_vm2, %v631_v2, %v27_v4  ;;  %v43_v9 = vsel %vm42_vm3, %v631_v2, %v27_v4  ;;  %v584_v5 = vld [vmem:[%s841_s2 + $0x30] sm:$0xff] }
   0x6   :  { %v47_v10 = vrot.slane %v46_v6, 6  ;;  %v50_v11 = vrot.slane %v49_v7, 7  ;;  %v41_v12 = vrot.slane %v40_v8, 4  ;;  %v44_v13 = vrot.slane %v43_v9, 5  ;;  %v585_v6 = vld [vmem:[%s841_s2 + $0x38] sm:$0xff] }
   0x7   :  { %v34_v14 = vsel %vm33_vm4, %v631_v2, %v27_v4  ;;  %v37_v15 = vsel %vm36_vm5, %v631_v2, %v27_v4  ;;  %v29_v16 = vsel %vm28_vm6, %v631_v2, %v27_v4  ;;  %v31_v17 = vsel %vm30_vm7, %v631_v2, %v27_v4  ;;  %v583_v4 = vld [vmem:[%s841_s2 + $0x28] sm:$0xff] }
   0x8   :  { %v650_v18 = vperm.slane %v47_v10, 0  ;;  %v652_v19 = vperm.slane %v50_v11, 0  ;;  %v654_v20 = vperm.slane %v47_v10, 1  ;;  %v656_v21 = vperm.slane %v50_v11, 1 }
   0x9   :  { %v658_v22 = vperm.slane %v41_v12, 0  ;;  %v660_v23 = vperm.slane %v44_v13, 0  ;;  %v662_v24 = vperm.slane %v41_v12, 1  ;;  %v664_v25 = vperm.slane %v44_v13, 1 }
   0xa   :  { %v95_v26 = vmul.f32 %v650_v18, %v631_v2  ;;  %v97_v27 = vmul.f32 %v652_v19, %v631_v2  ;;  %v96_v28 = vmul.f32 %v654_v20, %v636_v3  ;;  %v98_v29 = vmul.f32 %v656_v21, %v636_v3 }
   0xb   :  { %v91_v30 = vmul.f32 %v658_v22, %v631_v2  ;;  %v93_v31 = vmul.f32 %v660_v23, %v631_v2  ;;  %v92_v32 = vmul.f32 %v662_v24, %v636_v3  ;;  %v94_v33 = vmul.f32 %v664_v25, %v636_v3 }
   0xc   :  { %v105_v34 = vpack.c.bf16 %v97_v27, %v95_v26  ;;  %v106_v35 = vpack.c.bf16 %v98_v29, %v96_v28  ;;  %v35_v36 = vrot.slane %v34_v14, 2  ;;  %v38_v37 = vrot.slane %v37_v15, 3 }
   0xd   :  { %v103_v38 = vpack.c.bf16 %v93_v31, %v91_v30  ;;  %v32_v39 = vrot.slane %v31_v17, 1  ;;  %v682_v40 = vperm.slane %v29_v16, 0  ;;  %v104_v46 = vpack.c.bf16 %v94_v33, %v92_v32 }
   0xe   :  { %155 = vmatpush.bf16.msra.mxu0 %v105_v34  ;;  %169 = vmatpush.bf16.msra.mxu1 %v106_v35  ;;  %v687_v42 = vperm.slane %v35_v36, 0  ;;  %v689_v43 = vperm.slane %v38_v37, 0  ;;  %v691_v44 = vperm.slane %v35_v36, 1  ;;  %v693_v45 = vperm.slane %v38_v37, 1 }
   0xf   :  { %v695_v47 = vperm.slane %v32_v39, 0  ;;  %v697_v48 = vperm.slane %v29_v16, 1  ;;  %v699_v49 = vperm.slane %v32_v39, 1  ;;  %v83_v55 = vmul.f32 %v682_v40, %v631_v2 }
  0x10   :  { %v87_v50 = vmul.f32 %v687_v42, %v631_v2  ;;  %v89_v51 = vmul.f32 %v689_v43, %v631_v2  ;;  %v88_v52 = vmul.f32 %v691_v44, %v636_v3  ;;  %v90_v53 = vmul.f32 %v693_v45, %v636_v3 }
  0x11   :  { %v85_v56 = vmul.f32 %v695_v47, %v631_v2  ;;  %v84_v58 = vmul.f32 %v697_v48, %v636_v3  ;;  %v86_v59 = vmul.f32 %v699_v49, %v636_v3  ;;  %v582_v3 = vld [vmem:[%s841_s2 + $0x20] sm:$0xff] }
  0x12   :  { %132 = vxpose.xlu0.c.b16.cont [2/4] (short) (narrow) %v575_v1, 16  ;;  %156 = vmatpush.bf16.msra.mxu0 %v103_v38  ;;  %v101_v54 = vpack.c.bf16 %v89_v51, %v87_v50  ;;  %v102_v57 = vpack.c.bf16 %v90_v53, %v88_v52  ;;  %v581_v1 = vld [vmem:[%s841_s2 + $0x18] sm:$0xff]  ;;  %s597_s2 = smov 124  }
  0x13   :  { %170 = vmatpush.bf16.msra.mxu1 %v104_v46  ;;  %v99_v60 = vpack.c.bf16 %v85_v56, %v83_v55  ;;  %v100_v61 = vpack.c.bf16 %v86_v59, %v84_v58 }
  0x14   :  { %417 = vxpose.xlu1.c.b16.cont [2/8] (narrow) %v579_v63, 16 }
  0x16   :  { %157 = vmatpush.bf16.msra.mxu0 %v101_v54 }
  0x17   :  { %171 = vmatpush.bf16.msra.mxu1 %v102_v57 }
  0x1a   :  { %158 = vmatpush.bf16.msra.mxu0 %v99_v60 }
  0x1b   :  { %172 = vmatpush.bf16.msra.mxu1 %v100_v61 }
  0x22   :  { %133 = vxpose.xlu0.c.b16.cont [3/4] (short) (narrow) %v576_v41, 16 }
  0x24   :  { %418 = vxpose.xlu1.c.b16.cont [3/8] (narrow) %v580_v0, 16 }
  0x32   :  { %134 = vxpose.xlu0.c.b16.end [4/4] (short) (narrow) %v577_v62, 16 }
  0x34   :  { %419 = vxpose.xlu1.c.b16.cont [4/8] (narrow) %v581_v1, 16 }
  0x44   :  { %420 = vxpose.xlu1.c.b16.cont [5/8] (narrow) %v582_v3, 16 }
  0x54   :  { %421 = vxpose.xlu1.c.b16.cont [6/8] (narrow) %v583_v4, 16 }
  0x64   :  { %422 = vxpose.xlu1.c.b16.cont [7/8] (narrow) %v584_v5, 16 }
  0x74   :  { %423 = vxpose.xlu1.c.b16.end [8/8] (narrow) %v585_v6, 16 }
  0xae   :  { %v139_v2 = vpop.trf.xlu0 }
  0xaf   :  { %540 = vmatmul.msk.bf16.vlgmr.msra.gmra.mxu0 %vm147_vm8, %v139_v2  ;;  %541 = vmatmul.msk.bf16.vlgmr.msra.gmra.mxu1 %vm147_vm8, %v139_v2 }
 0x12c   :  { %v741_v7 = vpop.f32.mrf.mxu0  ;;  %v743_v8 = vpop.f32.mrf.mxu1 }
 0x12d   :  { %181 = vrot.lane.b32.xlu2 %v741_v7, %s596_s11  ;;  %v348_v11 = vmul.f32 %v741_v7, %v652_v19  ;;  %v349_v13 = vmul.f32 %v743_v8, %v656_v21  ;;  %v345_v27 = vmul.f32 %v743_v8, %v654_v20  ;;  %v341_v31 = vmul.f32 %v743_v8, %v664_v25 }
 0x12e   :  { %v337_v35 = vmul.f32 %v743_v8, %v662_v24  ;;  %v333_v39 = vmul.f32 %v743_v8, %v693_v45  ;;  %v329_v51 = vmul.f32 %v743_v8, %v691_v44  ;;  %v325_v55 = vmul.f32 %v743_v8, %v699_v49 }
 0x12f   :  { %v321_v59 = vmul.f32 %v743_v8, %v697_v48 }
 0x134   :  { %v747_v9 = vpop.f32.mrf.mxu0  ;;  %v749_v10 = vpop.f32.mrf.mxu1 }
 0x135   :  { %191 = vrot.lane.b32.xlu2 %v743_v8, %s596_s11  ;;  %v350_v12 = vmul.f32 %v747_v9, %v652_v19  ;;  %v351_v14 = vmul.f32 %v749_v10, %v656_v21  ;;  %v347_v17 = vmul.f32 %v749_v10, %v654_v20  ;;  %v346_v26 = vmul.f32 %v747_v9, %v650_v18 }
 0x136   :  { %v344_v19 = vmul.f32 %v741_v7, %v650_v18  ;;  %v343_v21 = vmul.f32 %v749_v10, %v664_v25  ;;  %v342_v30 = vmul.f32 %v747_v9, %v660_v23  ;;  %v340_v20 = vmul.f32 %v741_v7, %v660_v23 }
 0x137   :  { %v366_v15 = vpack.c.bf16 %v350_v12, %v348_v11  ;;  %v367_v16 = vpack.c.bf16 %v351_v14, %v349_v13  ;;  %v365_v28 = vpack.c.bf16 %v347_v17, %v345_v27  ;;  %v339_v32 = vmul.f32 %v749_v10, %v662_v24 }
 0x138   :  { %v364_v29 = vpack.c.bf16 %v346_v26, %v344_v19  ;;  %v363_v18 = vpack.c.bf16 %v343_v21, %v341_v31  ;;  %v362_v33 = vpack.c.bf16 %v342_v30, %v340_v20  ;;  %v338_v34 = vmul.f32 %v747_v9, %v658_v22 }
 0x139   :  { %432 = vmatpush.bf16.msra.mxu2 %v366_v15  ;;  %445 = vmatpush.bf16.msra.mxu3 %v367_v16  ;;  %v336_v25 = vmul.f32 %v741_v7, %v658_v22  ;;  %v361_v36 = vpack.c.bf16 %v339_v32, %v337_v35  ;;  %v335_v23 = vmul.f32 %v749_v10, %v693_v45 }
 0x13a   :  { %v334_v38 = vmul.f32 %v747_v9, %v689_v43  ;;  %v332_v24 = vmul.f32 %v741_v7, %v689_v43  ;;  %v331_v41 = vmul.f32 %v749_v10, %v691_v44  ;;  %v330_v50 = vmul.f32 %v747_v9, %v687_v42 }
 0x13b   :  { %v360_v37 = vpack.c.bf16 %v338_v34, %v336_v25  ;;  %v359_v22 = vpack.c.bf16 %v335_v23, %v333_v39  ;;  %v328_v45 = vmul.f32 %v741_v7, %v687_v42  ;;  %v327_v43 = vmul.f32 %v749_v10, %v699_v49 }
 0x13c   :  { %v358_v46 = vpack.c.bf16 %v334_v38, %v332_v24  ;;  %v357_v52 = vpack.c.bf16 %v331_v41, %v329_v51  ;;  %v326_v54 = vmul.f32 %v747_v9, %v695_v47  ;;  %v324_v44 = vmul.f32 %v741_v7, %v695_v47  ;;  %v424_v47 = vpop.trf.xlu1 }
 0x13d   :  { %446 = vmatpush.bf16.msra.mxu3 %v365_v28  ;;  %183 = vrot.lane.b32.xlu2 %v747_v9, %s596_s11  ;;  %v356_v53 = vpack.c.bf16 %v330_v50, %v328_v45  ;;  %v355_v56 = vpack.c.bf16 %v327_v43, %v325_v55  ;;  %v323_v42 = vmul.f32 %v749_v10, %v697_v48 }
 0x13e   :  { %433 = vmatpush.bf16.msra.mxu2 %v364_v29  ;;  %v354_v57 = vpack.c.bf16 %v326_v54, %v324_v44  ;;  %v322_v58 = vmul.f32 %v747_v9, %v682_v40  ;;  %v320_v49 = vmul.f32 %v741_v7, %v682_v40 }
 0x13f   :  { %v353_v60 = vpack.c.bf16 %v323_v42, %v321_v59 }
 0x140   :  { %v352_v61 = vpack.c.bf16 %v322_v58, %v320_v49 }
 0x141   :  { %447 = vmatpush.bf16.msra.mxu3 %v363_v18 }
 0x142   :  { %434 = vmatpush.bf16.msra.mxu2 %v362_v33 }
 0x145   :  { %448 = vmatpush.bf16.msra.mxu3 %v361_v36  ;;  %193 = vrot.lane.b32.xlu2 %v749_v10, %s596_s11 }
 0x146   :  { %435 = vmatpush.bf16.msra.mxu2 %v360_v37 }
 0x149   :  { %449 = vmatpush.bf16.msra.mxu3 %v359_v22 }
 0x14a   :  { %436 = vmatpush.bf16.msra.mxu2 %v358_v46 }
 0x14d   :  { %450 = vmatpush.bf16.msra.mxu3 %v357_v52 }
 0x14e   :  { %437 = vmatpush.bf16.msra.mxu2 %v356_v53 }
 0x151   :  { %451 = vmatpush.bf16.msra.mxu3 %v355_v56 }
 0x152   :  { %438 = vmatpush.bf16.msra.mxu2 %v354_v57 }
 0x155   :  { %452 = vmatpush.bf16.msra.mxu3 %v353_v60 }
 0x156   :  { %439 = vmatpush.bf16.msra.mxu2 %v352_v61 }
 0x158   :  { %453 = vmatmul.bf16.vlgmr.msra.gmra.mxu3 %v424_v47 }
 0x159   :  { %440 = vmatmul.bf16.vlgmr.msra.gmra.mxu2 %v424_v47 }
 0x187   :  { %v182_v62 = vpop.permute.xlu2 %181 }
 0x188   :  { %v187_v4 = vadd.f32 %v182_v62, %v741_v7 }
 0x18f   :  { %v192_v63 = vpop.permute.xlu2 %191 }
 0x190   :  { %v197_v5 = vadd.f32 %v192_v63, %v743_v8 }
 0x197   :  { %v184_v0 = vpop.permute.xlu2 %183 }
 0x198   :  { %v188_v1 = vadd.f32 %v184_v0, %v747_v9 }
 0x19a   :  { %203 = vrot.lane.b32.xlu0 %v188_v1, %s597_s2 }
 0x19f   :  { %v194_v6 = vpop.permute.xlu2 %193 }
 0x1a0   :  { %v198_v11 = vadd.f32 %v194_v6, %v749_v10 }
 0x1db   :  { %v454_v2 = vpop.f32.mrf.mxu3 }
 0x1dc   :  { %v441_v48 = vpop.f32.mrf.mxu2 }
 0x1dd   :  { %459 = vrot.lane.b32.xlu2 %v441_v48, %s596_s11 }
 0x1e3   :  { %v456_v3 = vpop.f32.mrf.mxu3 }
 0x1e4   :  { %v443_v40 = vpop.f32.mrf.mxu2 }
 0x1e5   :  { %464 = vrot.lane.b32.xlu2 %v454_v2, %s596_s11 }
 0x1ed   :  { %201 = vrot.lane.b32.xlu2 %v187_v4, %s597_s2 }
 0x1f5   :  { %211 = vrot.lane.b32.xlu2 %v197_v5, %s597_s2 }
 0x1fd   :  { %213 = vrot.lane.b32.xlu2 %v198_v11, %s597_s2 }
 0x20c   :  { %v204_v17 = vpop.permute.xlu0 %203 }
 0x20d   :  { %v208_v7 = vadd.f32 %v204_v17, %v188_v1 }
 0x237   :  { %v460_v9 = vpop.permute.xlu2 %459 }
 0x238   :  { %v462_v12 = vadd.f32 %v460_v9, %v441_v48 }
 0x23a   :  { %469 = vrot.lane.b32.xlu2 %v462_v12, %s597_s2 }
 0x23f   :  { %v465_v13 = vpop.permute.xlu2 %464 }
 0x240   :  { %v467_v14 = vadd.f32 %v465_v13, %v454_v2 }
 0x242   :  { %474 = vrot.lane.b32.xlu2 %v467_v14, %s597_s2 }
 0x247   :  { %v202_v15 = vpop.permute.xlu2 %201 }
 0x248   :  { %v207_v16 = vadd.f32 %v202_v15, %v187_v4 }
 0x24a   :  { %221 = vrot.lane.b32.xlu2 %v207_v16, %s598_s12 }
 0x24f   :  { %v212_v26 = vpop.permute.xlu2 %211 }
 0x250   :  { %v217_v8 = vadd.f32 %v212_v26, %v197_v5 }
 0x252   :  { %223 = vrot.lane.b32.xlu2 %v208_v7, %s598_s12 }
 0x257   :  { %v214_v27 = vpop.permute.xlu2 %213 }
 0x258   :  { %v218_v19 = vadd.f32 %v214_v27, %v198_v11 }
 0x25a   :  { %231 = vrot.lane.b32.xlu2 %v217_v8, %s598_s12 }
 0x262   :  { %233 = vrot.lane.b32.xlu2 %v218_v19, %s598_s12 }
 0x294   :  { %v470_v10 = vpop.permute.xlu2 %469 }
 0x295   :  { %v472_v28 = vadd.f32 %v470_v10, %v462_v12 }
 0x297   :  { %479 = vrot.lane.b32.xlu1 %v472_v28, %s598_s12 }
 0x29c   :  { %v475_v21 = vpop.permute.xlu2 %474 }
 0x29d   :  { %v477_v29 = vadd.f32 %v475_v21, %v467_v14 }
 0x29f   :  { %484 = vrot.lane.b32.xlu2 %v477_v29, %s598_s12 }
 0x2a4   :  { %v222_v30 = vpop.permute.xlu2 %221 }
 0x2a5   :  { %v227_v31 = vadd.f32 %v222_v30, %v207_v16 }
 0x2a7   :  { %241 = vrot.lane.b32.xlu2 %v227_v31, %s599_s13 }
 0x2ac   :  { %v224_v20 = vpop.permute.xlu2 %223 }
 0x2ad   :  { %v228_v18 = vadd.f32 %v224_v20, %v208_v7 }
 0x2af   :  { %243 = vrot.lane.b32.xlu2 %v228_v18, %s599_s13 }
 0x2b4   :  { %v232_v32 = vpop.permute.xlu2 %231 }
 0x2b5   :  { %v237_v33 = vadd.f32 %v232_v32, %v217_v8 }
 0x2b7   :  { %251 = vrot.lane.b32.xlu2 %v237_v33, %s599_s13 }
 0x2bc   :  { %v234_v34 = vpop.permute.xlu2 %233 }
 0x2bd   :  { %v238_v35 = vadd.f32 %v234_v34, %v218_v19 }
 0x2bf   :  { %253 = vrot.lane.b32.xlu2 %v238_v35, %s599_s13 }
 0x2f9   :  { %v485_v25 = vpop.permute.xlu2 %484 }
 0x2fa   :  { %v487_v36 = vadd.f32 %v485_v25, %v477_v29 }
 0x2fc   :  { %494 = vrot.lane.b32.xlu0 %v487_v36, %s599_s13 }
 0x301   :  { %v242_v23 = vpop.permute.xlu2 %241 }
 0x302   :  { %v247_v41 = vadd.f32 %v242_v23, %v227_v31 }
 0x309   :  { %v480_v37 = vpop.permute.xlu1 %479  ;;  %v244_v38 = vpop.permute.xlu2 %243 }
 0x30a   :  { %v482_v39 = vadd.f32 %v480_v37, %v472_v28  ;;  %v248_v24 = vadd.f32 %v244_v38, %v228_v18 }
 0x30c   :  { %489 = vrot.lane.b32.xlu2 %v482_v39, %s599_s13  ;;  %263 = vrot.lane.b32.xlu0 %v248_v24, %s600_s14 }
 0x311   :  { %v252_v22 = vpop.permute.xlu2 %251 }
 0x312   :  { %v257_v50 = vadd.f32 %v252_v22, %v237_v33 }
 0x314   :  { %261 = vrot.lane.b32.xlu2 %v247_v41, %s600_s14 }
 0x319   :  { %v254_v46 = vpop.permute.xlu2 %253 }
 0x31a   :  { %v258_v51 = vadd.f32 %v254_v46, %v238_v35 }
 0x31c   :  { %271 = vrot.lane.b32.xlu2 %v257_v50, %s600_s14  ;;  %273 = vrot.lane.b32.xlu0 %v258_v51, %s600_s14 }
 0x366   :  { %v490_v45 = vpop.permute.xlu2 %489 }
 0x367   :  { %v492_v52 = vadd.f32 %v490_v45, %v482_v39 }
 0x369   :  { %499 = vrot.lane.b32.xlu2 %v492_v52, %s600_s14 }
 0x36e   :  { %v495_v43 = vpop.permute.xlu0 %494  ;;  %v262_v53 = vpop.permute.xlu2 %261 }
 0x36f   :  { %v497_v54 = vadd.f32 %v495_v43, %v487_v36  ;;  %v267_v55 = vadd.f32 %v262_v53, %v247_v41 }
 0x371   :  { %504 = vrot.lane.b32.xlu0 %v497_v54, %s600_s14  ;;  %281 = vrot.lane.b32.xlu2 %v267_v55, %s601_s15 }
 0x376   :  { %v272_v44 = vpop.permute.xlu2 %271 }
 0x377   :  { %v277_v56 = vadd.f32 %v272_v44, %v257_v50 }
 0x379   :  { %291 = vrot.lane.b32.xlu2 %v277_v56, %s601_s15 }
 0x37e   :  { %v264_v42 = vpop.permute.xlu0 %263 }
 0x37f   :  { %v268_v57 = vadd.f32 %v264_v42, %v248_v24 }
 0x381   :  { %283 = vrot.lane.b32.xlu0 %v268_v57, %s601_s15 }
 0x38e   :  { %v274_v58 = vpop.permute.xlu0 %273 }
 0x38f   :  { %v278_v59 = vadd.f32 %v274_v58, %v258_v51 }
 0x391   :  { %293 = vrot.lane.b32.xlu0 %v278_v59, %s601_s15 }
 0x3c3   :  { %v500_v49 = vpop.permute.xlu2 %499 }
 0x3c4   :  { %v502_v60 = vadd.f32 %v500_v49, %v492_v52 }
 0x3c6   :  { %509 = vrot.lane.b32.xlu2 %v502_v60, %s601_s15 }
 0x3cb   :  { %v282_v61 = vpop.permute.xlu2 %281 }
 0x3cc   :  { %v287_v62 = vadd.f32 %v282_v61, %v267_v55 }
 0x3d3   :  { %v292_v47 = vpop.permute.xlu2 %291 }
 0x3d4   :  { %v297_v63 = vadd.f32 %v292_v47, %v277_v56 }
 0x3d6   :  { %v299_v0 = vadd.f32 %v297_v63, %v287_v62 }
 0x3d8   :  { %302 = vst.msk [vmem:[%s842_s3] sm:$0xff] %vm301_vm9, %v299_v0 }
 0x3e3   :  { %v505_v1 = vpop.permute.xlu0 %504 }
 0x3e4   :  { %v507_v2 = vadd.f32 %v505_v1, %v497_v54 }
 0x3e6   :  { %514 = vrot.lane.b32.xlu1 %v507_v2, %s601_s15 }
 0x3f3   :  { %v284_v48 = vpop.permute.xlu0 %283 }
 0x3f4   :  { %v288_v40 = vadd.f32 %v284_v48, %v268_v57 }
 0x403   :  { %v294_v3 = vpop.permute.xlu0 %293 }
 0x404   :  { %v298_v4 = vadd.f32 %v294_v3, %v278_v59 }
 0x406   :  { %v300_v5 = vadd.f32 %v298_v4, %v288_v40 }
 0x408   :  { %303 = vst.msk [vmem:[%s842_s3 + $0x8] sm:$0xff] %vm301_vm9, %v300_v5 }
 0x420   :  { %v510_v6 = vpop.permute.xlu2 %509 }
 0x421   :  { %v512_v9 = vadd.f32 %v510_v6, %v502_v60 }
 0x458   :  { %v515_v11 = vpop.permute.xlu1 %514 }
 0x459   :  { %v517_v12 = vadd.f32 %v515_v11, %v507_v2 }
 0x45b   :  { %v518_v13 = vadd.f32 %v517_v12, %v512_v9 }
 0x45d   :  { %519 = vst.msk [vmem:[%s842_s3 + $0x10] sm:$0xff] %vm301_vm9, %v518_v13 }

</bundles_post_ra>
